<compile_context>
chip_gen: v7x
topology: tpu7x:2x2x1
jax: 0.10.0
libtpu: 0.0.40
codegen_flags: <defaults>
</compile_context>

<pallas_src>
import functools
import numpy as np
import jax
import jax.numpy as jnp
from jax.experimental import pallas as pl
from jax.experimental.pallas import tpu as pltpu

LANE = 128


def _round_up(a, b):
    return (a + b - 1) // b * b


# ---------------------------------------------------------------------------
# Pallas kernel: whole Branch_Attention forward in one gridless call (4 MXU dots)
# ---------------------------------------------------------------------------
def _fused_kernel(p_ref, w1_ref, w2x_ref, w2yz_ref, r_ref, o_ref, *, cout, myp, mzp):
    """Whole-array VMEM operands.

    p_ref    : (9*Cin+1, 4*Myp+Myp+Mzp) bf16  im2col patches of x|y|z, column-
               concatenated; last row is constant 1 (BN bias fold); x columns
               are pool-window-major (i, j, n, ho, wo), each group Myp wide.
    w1_ref   : (3*Cout, 9*Cin+1) bf16  [w1x; w1y; w1z], BN scale folded into the
               weights, BN bias as the last column.
    w2x_ref  : (Cout, Cout)   bf16  head-1 1x1 conv weight.
    w2yz_ref : (Cout, 2*Cout) bf16  [w2y | w2z] fused heads-2/3 1x1 conv weight.
    r_ref    : (Mzp, Myp)     bf16  bilinear align_corners upsample matrix
               (block-diag over batch; zero rows/cols in the padding).
    o_ref    : (Cout, Myp)    f32   fused output, columns ordered (n, h, w).
    """
    # All three conv3x3 + BN(+bias) heads in a single MXU dot (bf16 in, f32 acc).
    big = jnp.dot(w1_ref[...], p_ref[...], preferred_element_type=jnp.float32)

    xh = jnp.maximum(big[0:cout, 0:4 * myp], 0.0)                            # (Cout, 4*Myp)
    yh = jnp.maximum(big[cout:2 * cout, 4 * myp:5 * myp], 0.0)               # (Cout, Myp)
    zh = jnp.maximum(big[2 * cout:3 * cout, 5 * myp:5 * myp + mzp], 0.0)     # (Cout, Mzp)

    # Head 1: 1x1 conv, then MaxPool2d(2,2) as a max over 4 lane-aligned slabs.
    x1 = jnp.dot(w2x_ref[...], xh.astype(jnp.bfloat16),
                 preferred_element_type=jnp.float32)                         # (Cout, 4*Myp)
    xpool = jnp.maximum(jnp.maximum(x1[:, 0:myp], x1[:, myp:2 * myp]),
                        jnp.maximum(x1[:, 2 * myp:3 * myp], x1[:, 3 * myp:4 * myp]))

    # Head 3: bilinear(align_corners=True) upsample as one dot. The 1x1 conv
    # (linear over channels) and the upsample (linear over pixels) commute, so
    # the upsample happens first and the 1x1 is fused with head-2's below.
    zup = jnp.dot(zh.astype(jnp.bfloat16), r_ref[...],
                  preferred_element_type=jnp.float32)                        # (Cout, Myp)

    # Heads 2+3 1x1 convs fused into one (Cout, 2*Cout) x (2*Cout, Myp) dot.
    stacked = jnp.concatenate([yh, zup], axis=0).astype(jnp.bfloat16)        # (2*Cout, Myp)
    yz = jnp.dot(w2yz_ref[...], stacked, preferred_element_type=jnp.float32)

    o_ref[...] = xpool + yz


# ---------------------------------------------------------------------------
# Trace-time preparation: transposed im2col, weight/bias folding, upsample matrix
# ---------------------------------------------------------------------------
def _patch_stack(x_nchw):
    # (N, Cin, H, W) -> (9*Cin, N, H, W); row order (ky, kx, ci); zero pad = 1.
    N, Cin, H, W = x_nchw.shape
    xp = jnp.pad(x_nchw, ((0, 0), (0, 0), (1, 1), (1, 1)))
    shifts = [xp[:, :, ky:ky + H, kx:kx + W] for ky in range(3) for kx in range(3)]
    pat = jnp.stack(shifts, axis=0)                 # (9, N, Cin, H, W)
    pat = jnp.transpose(pat, (0, 2, 1, 3, 4))       # (9, Cin, N, H, W)
    return pat.reshape(9 * Cin, N, H, W)


def _patches_T(x_nchw, m_pad):
    # Columns ordered (n, h, w), zero-padded to m_pad columns.
    N, Cin, H, W = x_nchw.shape
    p = _patch_stack(x_nchw).reshape(9 * Cin, N * H * W)
    return jnp.pad(p, ((0, 0), (0, m_pad - N * H * W)))


def _patches_T_pool_major(x_nchw, m_pad):
    # Columns ordered (i, j, n, ho, wo) with h = 2*ho+i, w = 2*wo+j, each (i, j)
    # group zero-padded to m_pad columns, so MaxPool2d(2,2) of the head output
    # is a max over 4 lane-aligned column slabs.
    N, Cin, H, W = x_nchw.shape
    assert H % 2 == 0 and W % 2 == 0, "x spatial dims must be even for MaxPool2d(2,2)"
    Ho, Wo = H // 2, W // 2
    pat = _patch_stack(x_nchw)                      # (9*Cin, N, H, W)
    pat = pat.reshape(9 * Cin, N, Ho, 2, Wo, 2)
    pat = jnp.transpose(pat, (0, 3, 5, 1, 2, 4))    # (9*Cin, i, j, N, Ho, Wo)
    pat = pat.reshape(9 * Cin, 4, N * Ho * Wo)
    pat = jnp.pad(pat, ((0, 0), (0, 0), (0, m_pad - N * Ho * Wo)))
    return pat.reshape(9 * Cin, 4 * m_pad)


def _fold_head_params(params):
    # Conv3x3 (no bias) -> BN(eval) fold: scale into w1, bias as extra column.
    w3, gamma, beta, mean, var, w1x1 = params
    Cout, Cin = w3.shape[0], w3.shape[1]
    inv = gamma / jnp.sqrt(var + 1e-5)
    w1 = jnp.transpose(w3, (0, 2, 3, 1)).reshape(Cout, 9 * Cin) * inv[:, None]
    b = (beta - mean * inv)[:, None]                 # (Cout, 1)
    w1b = jnp.concatenate([w1, b], axis=1)           # (Cout, 9*Cin + 1)
    w2 = w1x1[:, :, 0, 0]                            # (Cout_out, Cout_in)
    return w1b, w2


def _bilinear_matrix(N, Hs, Ws, Ht, Wt, mz_pad, my_pad):
    # Constant R (mz_pad, my_pad): up_flat = src_flat @ R matches
    # F.interpolate(mode='bilinear', align_corners=True), columns (n, h, w).
    def axis_mat(t, s):
        m = np.zeros((t, s), np.float32)
        if t == 1 or s == 1:
            m[:, 0] = 1.0
            return m
        coords = np.arange(t, dtype=np.float64) * ((s - 1) / (t - 1))
        lo = np.floor(coords).astype(np.int64)
        hi = np.minimum(lo + 1, s - 1)
        w = (coords - lo).astype(np.float32)
        m[np.arange(t), lo] += 1.0 - w
        m[np.arange(t), hi] += w
        return m

    K = np.kron(axis_mat(Ht, Hs), axis_mat(Wt, Ws))          # (Ht*Wt, Hs*Ws)
    R = np.kron(np.eye(N, dtype=np.float32), K.T.astype(np.float32))
    # TODO(synk): for large N replace the block-diagonal kron with a per-batch
    # (Hs*Ws, Ht*Wt) factor or the separable Ry/Rx form (O(N) instead of O(N^2)).
    Rp = np.zeros((mz_pad, my_pad), np.float32)
    Rp[:R.shape[0], :R.shape[1]] = R
    return jnp.asarray(Rp, jnp.float32)


# ---------------------------------------------------------------------------
# Branch_Attention forward
# ---------------------------------------------------------------------------
def branch_attention(x, y, z, params1, params2, params3):
    N, Cin, Hx, Wx = x.shape
    _, _, Hy, Wy = y.shape
    _, _, Hz, Wz = z.shape
    Cout = params1[0].shape[0]
    assert Hx == 2 * Hy and Wx == 2 * Wy, "x must be 2x the spatial size of y"
    My, Mz = N * Hy * Wy, N * Hz * Wz
    Myp, Mzp = _round_up(My, LANE), _round_up(Mz, LANE)
    K1 = 9 * Cin + 1       # +1 row of ones for the folded BN bias

    # TODO(synk): for large inputs move im2col into the kernel (9 shifted
    # accumulating dots on the raw padded inputs) instead of this XLA chain.
    xp = _patches_T_pool_major(x, Myp)               # (9*Cin, 4*Myp)
    yp = _patches_T(y, Myp)                          # (9*Cin, Myp)
    zp = _patches_T(z, Mzp)                          # (9*Cin, Mzp)
    p_all = jnp.concatenate([xp, yp, zp], axis=1)
    p_all = jnp.concatenate(
        [p_all, jnp.ones((1, p_all.shape[1]), p_all.dtype)], axis=0)
    p_all = p_all.astype(jnp.bfloat16)               # (K1, 5*Myp + Mzp)

    w1x, w2x = _fold_head_params(params1)
    w1y, w2y = _fold_head_params(params2)
    w1z, w2z = _fold_head_params(params3)
    w1_all = jnp.concatenate([w1x, w1y, w1z], axis=0).astype(jnp.bfloat16)  # (3*Cout, K1)
    w2x = w2x.astype(jnp.bfloat16)                                          # (Cout, Cout)
    w2yz = jnp.concatenate([w2y, w2z], axis=1).astype(jnp.bfloat16)         # (Cout, 2*Cout)
    r = _bilinear_matrix(N, Hz, Wz, Hy, Wy, Mzp, Myp).astype(jnp.bfloat16)  # (Mzp, Myp)

    mtot = p_all.shape[1]
    flops = 2 * (3 * Cout * K1 * mtot            # fused conv3x3+BN dot
                 + Cout * Cout * 4 * Myp         # head-1 1x1
                 + Cout * Mzp * Myp              # bilinear upsample
                 + Cout * 2 * Cout * Myp)        # fused heads-2/3 1x1
    bytes_accessed = (2 * (p_all.size + w1_all.size + w2x.size + w2yz.size + r.size)
                      + 4 * Cout * Myp)

    vmem = pl.BlockSpec(memory_space=pltpu.MemorySpace.VMEM)
    o = pl.pallas_call(
        functools.partial(_fused_kernel, cout=Cout, myp=Myp, mzp=Mzp),
        out_shape=jax.ShapeDtypeStruct((Cout, Myp), jnp.float32),
        in_specs=[vmem] * 5,
        out_specs=vmem,
        cost_estimate=pl.CostEstimate(flops=flops, transcendentals=0,
                                      bytes_accessed=bytes_accessed),
    )(p_all, w1_all, w2x, w2yz, r)
    # TODO(synk): if shapes grow past ~half of v7x's 64 MiB VMEM, tile the pixel
    # (lane) axis with a "parallel" grid dimension (512-lane blocks) instead of
    # keeping the gridless whole-array strategy.

    # (Cout, n*h*w) lane-dense slab -> NCHW.
    o = o[:, :My]
    return jnp.transpose(o.reshape(Cout, N, Hy, Wy), (1, 0, 2, 3))


def make_head_params(key, in_channels, out_channels):
    k1, k2, k3, k4 = jax.random.split(key, 4)
    w3 = 0.1 * jax.random.normal(k1, (out_channels, in_channels, 3, 3), jnp.float32)
    gamma = 1.0 + 0.05 * jax.random.normal(k2, (out_channels,), jnp.float32)
    beta = 0.05 * jax.random.normal(k3, (out_channels,), jnp.float32)
    mean = jnp.zeros((out_channels,), jnp.float32)   # BatchNorm running stats
    var = jnp.ones((out_channels,), jnp.float32)     # (eval-mode semantics)
    w1x1 = 0.1 * jax.random.normal(k4, (out_channels, out_channels, 1, 1), jnp.float32)
    # TODO(synk): training-mode BatchNorm (batch statistics) is not modeled; eval mode only.
    return (w3, gamma, beta, mean, var, w1x1)


# ---------------------------------------------------------------------------
# Pure-XLA f32 reference (for correctness check only)
# ---------------------------------------------------------------------------
def _bilinear_ref(x_nchw, Ht, Wt):
    N, C, Hs, Ws = x_nchw.shape

    def coords(t, s):
        if t == 1 or s == 1:
            return jnp.zeros((t,), jnp.float32)
        return jnp.arange(t, dtype=jnp.float32) * ((s - 1) / (t - 1))

    yc, xc = coords(Ht, Hs), coords(Wt, Ws)
    y0 = jnp.floor(yc).astype(jnp.int32)
    x0 = jnp.floor(xc).astype(jnp.int32)
    y1 = jnp.minimum(y0 + 1, Hs - 1)
    x1 = jnp.minimum(x0 + 1, Ws - 1)
    wy = (yc - y0.astype(jnp.float32))[:, None]
    wx = (xc - x0.astype(jnp.float32))[None, :]

    def g(yi, xi):
        return x_nchw[:, :, yi[:, None], xi[None, :]]

    top = g(y0, x0) * (1.0 - wx) + g(y0, x1) * wx
    bot = g(y1, x0) * (1.0 - wx) + g(y1, x1) * wx
    return top * (1.0 - wy) + bot * wy


def _reference(x, y, z, p1, p2, p3):
    def head(inp, params):
        w3, gamma, beta, mean, var, w1x1 = params
        c = jax.lax.conv_general_dilated(
            inp, w3, (1, 1), ((1, 1), (1, 1)),
            dimension_numbers=("NCHW", "OIHW", "NCHW"),
            precision=jax.lax.Precision.HIGHEST)
        inv = gamma / jnp.sqrt(var + 1e-5)
        c = c * inv[None, :, None, None] + (beta - mean * inv)[None, :, None, None]
        c = jnp.maximum(c, 0.0)
        return jax.lax.conv_general_dilated(
            c, w1x1, (1, 1), "VALID",
            dimension_numbers=("NCHW", "OIHW", "NCHW"),
            precision=jax.lax.Precision.HIGHEST)

    xh = head(x, p1)
    n, c, h, w = xh.shape
    xh = jnp.max(xh.reshape(n, c, h // 2, 2, w // 2, 2), axis=(3, 5))
    yh = head(y, p2)
    zh = _bilinear_ref(head(z, p3), yh.shape[2], yh.shape[3])
    return xh + yh + zh


if __name__ == "__main__":
    key = jax.random.PRNGKey(0)
    kx, ky, kz, kp1, kp2, kp3 = jax.random.split(key, 6)

    in_channels, out_channels = 4, 8
    # x is downsampled 2x inside the module, z is upsampled to y's size,
    # so x must be 2x the spatial size of y; z may be any size.
    x = jax.random.normal(kx, (2, in_channels, 16, 16), jnp.float32)
    y = jax.random.normal(ky, (2, in_channels, 8, 8), jnp.float32)
    z = jax.random.normal(kz, (2, in_channels, 4, 4), jnp.float32)

    p1 = make_head_params(kp1, in_channels, out_channels)
    p2 = make_head_params(kp2, in_channels, out_channels)
    p3 = make_head_params(kp3, in_channels, out_channels)

    out = jax.jit(branch_attention)(x, y, z, p1, p2, p3)
    jax.block_until_ready(out)
    assert out.shape == (2, out_channels, 8, 8), out.shape

    ref = _reference(x, y, z, p1, p2, p3)
    err = float(jnp.max(jnp.abs(out - ref)))
    # Tolerance sized for bf16 matmul operands with f32 accumulation.
    assert err < 3e-2, f"max abs error vs XLA f32 reference: {err}"
    print("KERNEL_OK")
</pallas_src>

<mosaic_0001>
module attributes {stable_mosaic.version = 11 : i64} {
  func.func @_fused_kernel(%arg0: memref<37x768xbf16, #tpu.memory_space<vmem>>, %arg1: memref<24x37xbf16, #tpu.memory_space<vmem>>, %arg2: memref<8x8xbf16, #tpu.memory_space<vmem>>, %arg3: memref<8x16xbf16, #tpu.memory_space<vmem>>, %arg4: memref<128x128xbf16, #tpu.memory_space<vmem>>, %arg5: memref<8x128xf32, #tpu.memory_space<vmem>>) attributes {dimension_semantics = [], scalar_prefetch = 0 : i64, scratch_operands = 0 : i64, tpu.core_type = #tpu.core_type<tc>} {
    %c0 = arith.constant 0 : index
    %c0_0 = arith.constant 0 : index
    %0 = vector.load %arg1[%c0, %c0_0] : memref<24x37xbf16, #tpu.memory_space<vmem>>, vector<24x37xbf16>
    %c0_1 = arith.constant 0 : index
    %c0_2 = arith.constant 0 : index
    %1 = vector.load %arg0[%c0_1, %c0_2] : memref<37x768xbf16, #tpu.memory_space<vmem>>, vector<37x768xbf16>
    %cst = arith.constant dense<0.000000e+00> : vector<24x768xf32>
    %2 = tpu.matmul %0, %1, %cst {dimension_numbers = #tpu.dot_dimension_numbers<[1], [0], [0], [1], [0, 0, 1, 1], [], []>} : vector<24x37xbf16>, vector<37x768xbf16>, vector<24x768xf32> -> vector<24x768xf32>
    %3 = vector.extract_strided_slice %2 {offsets = [0, 0], sizes = [8, 512], strides = [1, 1]} : vector<24x768xf32> to vector<8x512xf32>
    %cst_3 = arith.constant 0.000000e+00 : f32
    %4 = vector.broadcast %cst_3 : f32 to vector<8x512xf32>
    %5 = arith.maximumf %3, %4 : vector<8x512xf32>
    %6 = vector.extract_strided_slice %2 {offsets = [8, 512], sizes = [8, 128], strides = [1, 1]} : vector<24x768xf32> to vector<8x128xf32>
    %cst_4 = arith.constant 0.000000e+00 : f32
    %7 = vector.broadcast %cst_4 : f32 to vector<8x128xf32>
    %8 = arith.maximumf %6, %7 : vector<8x128xf32>
    %9 = vector.extract_strided_slice %2 {offsets = [16, 640], sizes = [8, 128], strides = [1, 1]} : vector<24x768xf32> to vector<8x128xf32>
    %cst_5 = arith.constant 0.000000e+00 : f32
    %10 = vector.broadcast %cst_5 : f32 to vector<8x128xf32>
    %11 = arith.maximumf %9, %10 : vector<8x128xf32>
    %c0_6 = arith.constant 0 : index
    %c0_7 = arith.constant 0 : index
    %12 = vector.load %arg2[%c0_6, %c0_7] : memref<8x8xbf16, #tpu.memory_space<vmem>>, vector<8x8xbf16>
    %13 = arith.truncf %5 : vector<8x512xf32> to vector<8x512xbf16>
    %cst_8 = arith.constant dense<0.000000e+00> : vector<8x512xf32>
    %14 = tpu.matmul %12, %13, %cst_8 {dimension_numbers = #tpu.dot_dimension_numbers<[1], [0], [0], [1], [0, 0, 1, 1], [], []>} : vector<8x8xbf16>, vector<8x512xbf16>, vector<8x512xf32> -> vector<8x512xf32>
    %15 = vector.extract_strided_slice %14 {offsets = [0, 0], sizes = [8, 128], strides = [1, 1]} : vector<8x512xf32> to vector<8x128xf32>
    %16 = vector.extract_strided_slice %14 {offsets = [0, 128], sizes = [8, 128], strides = [1, 1]} : vector<8x512xf32> to vector<8x128xf32>
    %17 = arith.maximumf %15, %16 : vector<8x128xf32>
    %18 = vector.extract_strided_slice %14 {offsets = [0, 256], sizes = [8, 128], strides = [1, 1]} : vector<8x512xf32> to vector<8x128xf32>
    %19 = vector.extract_strided_slice %14 {offsets = [0, 384], sizes = [8, 128], strides = [1, 1]} : vector<8x512xf32> to vector<8x128xf32>
    %20 = arith.maximumf %18, %19 : vector<8x128xf32>
    %21 = arith.maximumf %17, %20 : vector<8x128xf32>
    %22 = arith.truncf %11 : vector<8x128xf32> to vector<8x128xbf16>
    %c0_9 = arith.constant 0 : index
    %c0_10 = arith.constant 0 : index
    %23 = vector.load %arg4[%c0_9, %c0_10] : memref<128x128xbf16, #tpu.memory_space<vmem>>, vector<128x128xbf16>
    %cst_11 = arith.constant dense<0.000000e+00> : vector<8x128xf32>
    %24 = tpu.matmul %22, %23, %cst_11 {dimension_numbers = #tpu.dot_dimension_numbers<[1], [0], [0], [1], [0, 0, 1, 1], [], []>} : vector<8x128xbf16>, vector<128x128xbf16>, vector<8x128xf32> -> vector<8x128xf32>
    %25 = tpu.concatenate %8, %24 in 0 : vector<8x128xf32>, vector<8x128xf32> -> vector<16x128xf32>
    %26 = arith.truncf %25 : vector<16x128xf32> to vector<16x128xbf16>
    %c0_12 = arith.constant 0 : index
    %c0_13 = arith.constant 0 : index
    %27 = vector.load %arg3[%c0_12, %c0_13] : memref<8x16xbf16, #tpu.memory_space<vmem>>, vector<8x16xbf16>
    %cst_14 = arith.constant dense<0.000000e+00> : vector<8x128xf32>
    %28 = tpu.matmul %27, %26, %cst_14 {dimension_numbers = #tpu.dot_dimension_numbers<[1], [0], [0], [1], [0, 0, 1, 1], [], []>} : vector<8x16xbf16>, vector<16x128xbf16>, vector<8x128xf32> -> vector<8x128xf32>
    %29 = arith.addf %21, %28 : vector<8x128xf32>
    %c0_15 = arith.constant 0 : index
    %c0_16 = arith.constant 0 : index
    %30 = vector.load %arg5[%c0_15, %c0_16] : memref<8x128xf32, #tpu.memory_space<vmem>>, vector<8x128xf32>
    tpu.vector_store %arg5[%c0_15, %c0_16], %29 {strides = array<i32>} : memref<8x128xf32, #tpu.memory_space<vmem>>, vector<8x128xf32>,
    return
  }
}

</mosaic_0001>

<bundles_post_ra>
// kernel: branch_attention.1
= control target key start
LH: loop header
LB: loop body
LE: loop exit
PB: predicated region body
PF: predicated region fallthrough
CT: control target
= control target key end

     0   :  { %vm129_vm0 = vcmask 1041408   ;;  %vm130_vm1 = vcmask 1042432   ;;  %v676_v1 = vmov 65535   ;;  %v677_v3 = vmov 0   ;;  %s827_s0 = inlined_call_operand.vmem [shape: bf16[37,768], index: 0, kind: input, shape index: {}]   ;;  %s828_s1 = inlined_call_operand.vmem [shape: bf16[24,37], index: 1, kind: input, shape index: {}]   ;;  %s829_s4 = inlined_call_operand.vmem [shape: bf16[128,128], index: 4, kind: input, shape index: {}]   ;;  %s830_s2 = inlined_call_operand.vmem [shape: bf16[8,8], index: 2, kind: input, shape index: {}]   ;;  %s831_s3 = inlined_call_operand.vmem [shape: bf16[8,16], index: 3, kind: input, shape index: {}]   ;;  %s832_s5 = inlined_call_operand.vmem [shape: f32[8,128], index: 5, kind: output, shape index: {}]  }
   0x1   :  { %v642_v0 = vld [vmem:[%s827_s0 + $0x4] ss:$24 sps:$4 sm:$0xff]   ;;  %v131_v2 = vsel %vm129_vm0, 4294967295, %v676_v1  ;;  %183 = vmatprep.mubr.bf16.mxu0 %v677_v3  ;;  %230 = vmatprep.mubr.bf16.mxu1 %v677_v3  ;;  %v644_v4 = vld [vmem:[%s827_s0] ss:$24 sps:$4 sm:$0xff]   ;;  %vm122_vm2 = vcmask 302080  }
   0x2   :  { %151 = vmatprep.subr.bf16.mxu0 %v642_v0  ;;  %v645_v5 = vld [vmem:[%s827_s0 + $0x34] ss:$24 sps:$4 sm:$0xff]   ;;  %v36_v6 = vld [vmem:[%s827_s0 + $0x60] sm:$0x77]  ;;  %v132_v7 = vsel %vm130_vm1, %v131_v2, 0  ;;  %v678_v28 = vmov 0.0  }
   0x3   :  { %152 = vmatpush1.bf16.msra.mxu0 %v644_v4  ;;  %v647_v8 = vld [vmem:[%s827_s0 + $0x30] ss:$24 sps:$4 sm:$0xff]   ;;  %v577_v9 = vcombine.high %v36_v6, %v36_v6  ;;  %v576_v10 = vcombine.low %v36_v6, %v36_v6  ;;  %v653_v13 = vld [vmem:[%s827_s0 + $0x14] ss:$24 sps:$4 sm:$0xff]   ;;  %v650_v15 = vld [vmem:[%s828_s1] sm:$0xff]   ;;  %vm679_vm3 = vmmov 0  }
   0x4   :  { %153 = vmatprep.subr.bf16.mxu0 %v645_v5  ;;  %v38_v14 = vld [vmem:[%s827_s0 + $0x70] sm:$0x77]  ;;  %v660_v16 = vld [vmem:[%s827_s0 + $0xc] ss:$24 sps:$4 sm:$0xff]   ;;  %v662_v17 = vld [vmem:[%s827_s0 + $0x8] ss:$24 sps:$4 sm:$0xff]  }
   0x5   :  { %v137_v11 = vand.u32 %v577_v9, %v132_v7  ;;  %v134_v12 = vand.u32 %v576_v10, %v132_v7  ;;  %v651_v18 = vld [vmem:[%s827_s0 + $0x10] ss:$24 sps:$4 sm:$0xff]   ;;  %v663_v19 = vld [vmem:[%s827_s0 + $0x3c] ss:$24 sps:$4 sm:$0xff]   ;;  %198 = vmatprep.subr.bf16.mxu1 %v660_v16  ;;  %v581_v22 = vcombine.high %v38_v14, %v38_v14  ;;  %v655_v23 = vld [vmem:[%s827_s0 + $0x40] ss:$24 sps:$4 sm:$0xff]   ;;  %v580_v24 = vcombine.low %v38_v14, %v38_v14 }
   0x6   :  { %v657_v20 = vld [vmem:[%s827_s0 + $0x44] ss:$24 sps:$4 sm:$0xff]   ;;  %199 = vmatpush1.bf16.msra.mxu1 %v662_v17  ;;  %v665_v21 = vld [vmem:[%s827_s0 + $0x38] ss:$24 sps:$4 sm:$0xff]   ;;  %v654_v26 = vld [vmem:[%s828_s1 + $0x8] ss:$0 sps:$4 sm:$0xff]  }
   0x7   :  { %154 = vmatpush1.bf16.msra.mxu0 %v647_v8  ;;  %200 = vmatprep.subr.bf16.mxu1 %v663_v19  ;;  %v149_v25 = vand.u32 %v581_v22, %v132_v7  ;;  %v146_v27 = vand.u32 %v580_v24, %v132_v7  ;;  %v666_v29 = vld [vmem:[%s829_s4] sm:$0xff]   ;;  %v37_v30 = vld [vmem:[%s827_s0 + $0x68] sm:$0x77]  ;;  %v670_v36 = vld [vmem:[%s829_s4 + $0x10] sm:$0xff]   ;;  %vm307_vm4 = vcmask 1043456   ;;  %vm303_vm5 = vcmask 64512  }
   0x8   :  { %155 = vmatprep.subr.bf16.mxu0 %v137_v11  ;;  %v579_v31 = vcombine.high %v37_v30, %v37_v30  ;;  %v578_v32 = vcombine.low %v37_v30, %v37_v30  ;;  %v669_v35 = vld [vmem:[%s829_s4 + $0x8] sm:$0xff]   ;;  %v671_v37 = vld [vmem:[%s829_s4 + $0x18] sm:$0xff]   ;;  %v672_v38 = vld [vmem:[%s829_s4 + $0x20] sm:$0xff]   ;;  %vm512_vm6 = vcmask 130048  }
   0x9   :  { %v673_v39 = vld [vmem:[%s829_s4 + $0x28] sm:$0xff]   ;;  %v674_v40 = vld [vmem:[%s829_s4 + $0x30] sm:$0xff]   ;;  %v675_v41 = vld [vmem:[%s829_s4 + $0x38] sm:$0xff]  }
   0xa   :  { %201 = vmatpush1.bf16.msra.mxu1 %v665_v21  ;;  %v143_v33 = vand.u32 %v579_v31, %v132_v7  ;;  %v140_v34 = vand.u32 %v578_v32, %v132_v7  ;;  %v298_v51 = vld [vmem:[%s830_s2] sm:$0xf] }
   0xb   :  { %156 = vmatpush1.bf16.msra.mxu0 %v134_v12 }
   0xc   :  { %245 = vmatprep.subr.bf16.mxu0 %v653_v13  ;;  %202 = vmatprep.subr.bf16.mxu1 %v143_v33 }
   0xe   :  { %582 = vmatmul.mubr.msk.bf16.vlgmr.msra.gmra.mrb[0].mxu0 %vm122_vm2, %v650_v15  ;;  %203 = vmatpush1.bf16.msra.mxu1 %v140_v34 }
   0xf   :  { %246 = vmatpush1.bf16.msra.mxu0 %v651_v18  ;;  %191 = vmatprep.mubr.bf16.mxu0 %v677_v3 }
  0x10   :  { %247 = vmatprep.subr.bf16.mxu0 %v657_v20 }
  0x11   :  { %584 = vmatmul.mubr.msk.bf16.vlgmr.msra.gmra.mrb[0].mxu1 %vm122_vm2, %v650_v15 }
  0x12   :  { %238 = vmatprep.mubr.bf16.mxu1 %v677_v3 }
  0x13   :  { %248 = vmatpush1.bf16.msra.mxu0 %v655_v23 }
  0x14   :  { %249 = vmatprep.subr.bf16.mxu0 %v149_v25 }
  0x16   :  { %583 = vmatmul.mubr.msk.bf16.gmra.mrb[4].mxu0 %vm122_vm2, %v654_v26 }
  0x17   :  { %250 = vmatpush1.bf16.msra.mxu0 %v146_v27  ;;  %277 = vmatprep.mubr.bf16.mxu0 %v677_v3 }
  0x18   :  { %612 = vmatprep.subr.bf16.mxu0 %v678_v28 }
  0x19   :  { %585 = vmatmul.mubr.msk.bf16.gmra.mrb[4].mxu1 %vm122_vm2, %v654_v26 }
  0x1a   :  { %352 = vmatprep.mubr.bf16.mxu1 %v677_v3 }
  0x1e   :  { %586 = vmatmul.mubr.msk.bf16.vlgmr.msra.gmra.mrb[8].mxu0 %vm122_vm2, %v650_v15 }
  0x1f   :  { %284 = vmatprep.mubr.bf16.mxu0 %v677_v3  ;;  %613 = vmatpush3.bf16.msra.mxu0 %v666_v29 }
  0x20   :  { %614 = vmatprep.subr.bf16.mxu0 %v678_v28 }
  0x23   :  { %615 = vmatpush3.bf16.msra.mxu0 %v669_v35 }
  0x24   :  { %616 = vmatprep.subr.bf16.mxu0 %v678_v28 }
  0x26   :  { %587 = vmatmul.mubr.msk.bf16.gmra.mrb[12].mxu0 %vm122_vm2, %v654_v26  ;;  %v511_v26 = vld [vmem:[%s831_s3] sm:$0xf] }
  0x27   :  { %617 = vmatpush3.bf16.msra.mxu0 %v670_v36  ;;  %628 = vmatprep.mubr.msk.bf16.mxu0 %vm679_vm3, %v678_v28 }
  0x28   :  { %618 = vmatprep.subr.bf16.mxu0 %v678_v28 }
  0x2b   :  { %619 = vmatpush3.bf16.msra.mxu0 %v671_v37 }
  0x2c   :  { %620 = vmatprep.subr.bf16.mxu0 %v678_v28 }
  0x2f   :  { %621 = vmatpush3.bf16.msra.mxu0 %v672_v38 }
  0x30   :  { %622 = vmatprep.subr.bf16.mxu0 %v678_v28 }
  0x33   :  { %623 = vmatpush3.bf16.msra.mxu0 %v673_v39 }
  0x34   :  { %624 = vmatprep.subr.bf16.mxu0 %v678_v28 }
  0x37   :  { %625 = vmatpush3.bf16.msra.mxu0 %v674_v40 }
  0x38   :  { %626 = vmatprep.subr.bf16.mxu0 %v678_v28 }
  0x3b   :  { %627 = vmatpush3.bf16.msra.mxu0 %v675_v41 }
  0xe1   :  { %v185_v42 = vpop.f32.mrb[0].mxu0 }
  0xe2   :  { %v292_v43 = vmax.f32 %v185_v42, 0.0  ;;  %v187_v44 = vpop.f32.mrb[1].mxu0 }
  0xe3   :  { %v293_v45 = vmax.f32 %v187_v44, 0.0  ;;  %v189_v46 = vpop.f32.mrb[2].mxu0 }
  0xe4   :  { %v299_v47 = vpack.c.bf16 %v292_v43, %v292_v43  ;;  %v190_v48 = vpop.f32.mrb[3].mxu0  ;;  %v232_v2 = vpop.f32.mrb[0].mxu1 }
  0xe5   :  { %v300_v49 = vpack.c.bf16 %v293_v45, %v293_v45  ;;  %v294_v4 = vmax.f32 %v232_v2, 0.0  ;;  %v234_v5 = vpop.f32.mrb[1].mxu1 }
  0xe6   :  { %v309_v50 = vsel %vm307_vm4, %v299_v47, 0  ;;  %v295_v6 = vmax.f32 %v234_v5, 0.0  ;;  %v236_v7 = vpop.f32.mrb[2].mxu1 }
  0xe7   :  { %588 = vmatprep.subr.msk.bf16.mxu1 %vm307_vm4, %v300_v49  ;;  %v301_v8 = vpack.c.bf16 %v294_v4, %v294_v4  ;;  %v237_v9 = vpop.f32.mrb[3].mxu1 }
  0xe8   :  { %321 = vmatpush1.bf16.msra.mxu1 %v309_v50  ;;  %v302_v10 = vpack.c.bf16 %v295_v6, %v295_v6 }
  0xe9   :  { %v193_v52 = vpop.f32.mrb[4].mxu0 }
  0xea   :  { %v194_v53 = vpop.f32.mrb[5].mxu0  ;;  %590 = vmatprep.subr.msk.bf16.mxu1 %vm307_vm4, %v302_v10 }
  0xeb   :  { %v195_v54 = vpop.f32.mrb[6].mxu0  ;;  %589 = vmatmul.mubr.msk.bf16.vlgmr.msra.gmra.mrb[8].mxu1 %vm303_vm5, %v298_v51 }
  0xec   :  { %v196_v55 = vpop.f32.mrb[7].mxu0  ;;  %393 = vmatprep.mubr.bf16.mxu1 %v677_v3  ;;  %v315_v3 = vsel %vm307_vm4, %v301_v8, 0  ;;  %v240_v11 = vpop.f32.mrb[4].mxu1 }
  0xed   :  { %362 = vmatpush1.bf16.msra.mxu1 %v315_v3  ;;  %v241_v12 = vpop.f32.mrb[5].mxu1 }
  0xee   :  { %632 = vmatprep.subr.bf16.mxu1 %v678_v28  ;;  %v242_v13 = vpop.f32.mrb[6].mxu1 }
  0xef   :  { %v243_v14 = vpop.f32.mrb[7].mxu1 }
  0xf1   :  { %v279_v56 = vpop.f32.mrb[8].mxu0 }
  0xf2   :  { %v280_v57 = vpop.f32.mrb[9].mxu0 }
  0xf3   :  { %v281_v58 = vpop.f32.mrb[10].mxu0  ;;  %591 = vmatmul.mubr.msk.bf16.vlgmr.msra.gmra.mrb[12].mxu1 %vm303_vm5, %v298_v51 }
  0xf4   :  { %v283_v59 = vpop.f32.mrb[11].mxu0  ;;  %634 = vmatprep.mubr.msk.bf16.mxu1 %vm679_vm3, %v678_v28  ;;  %v296_v20 = vmax.f32 %v281_v58, 0.0 }
  0xf9   :  { %v286_v60 = vpop.f32.mrb[12].mxu0 }
  0xfa   :  { %v287_v61 = vpop.f32.mrb[13].mxu0 }
  0xfb   :  { %v297_v62 = vmax.f32 %v287_v61, 0.0  ;;  %v289_v63 = vpop.f32.mrb[14].mxu0 }
  0xfc   :  { %v290_v0 = vpop.f32.mrb[15].mxu0 }
  0xfd   :  { %v405_v1 = vpack.c.bf16 %v297_v62, %v297_v62 }
  0xff   :  { %629 = vmatmul.mubr.bf16.vlgmr.msra.gmra.mrb[16].mxu0 %v405_v1 }
 0x1be   :  { %v354_v15 = vpop.f32.mrb[8].mxu1 }
 0x1bf   :  { %v356_v16 = vpop.f32.mrb[9].mxu1 }
 0x1c0   :  { %v402_v17 = vmax.f32 %v354_v15, %v356_v16  ;;  %v358_v18 = vpop.f32.mrb[10].mxu1 }
 0x1c1   :  { %v359_v19 = vpop.f32.mrb[11].mxu1 }
 0x1c6   :  { %v395_v27 = vpop.f32.mrb[12].mxu1 }
 0x1c7   :  { %v397_v28 = vpop.f32.mrb[13].mxu1 }
 0x1c8   :  { %v403_v29 = vmax.f32 %v395_v27, %v397_v28  ;;  %v399_v30 = vpop.f32.mrb[14].mxu1 }
 0x1c9   :  { %v400_v31 = vpop.f32.mrb[15].mxu1 }
 0x1ca   :  { %v404_v32 = vmax.f32 %v402_v17, %v403_v29 }
 0x1d2   :  { %v504_v21 = vpop.f32.mrb[16].mxu0 }
 0x1d3   :  { %v510_v22 = vpack.c.bf16 %v504_v21, %v296_v20  ;;  %v630_v23 = vpop.f32.mrb[17].mxu0 }
 0x1d4   :  { %v507_v24 = vpop.f32.mrb[18].mxu0 }
 0x1d5   :  { %v631_v25 = vpop.f32.mrb[19].mxu0  ;;  %633 = vmatpush3.bf16.msra.mxu1 %v510_v22 }
 0x1d8   :  { %635 = vmatmul.mubr.msk.bf16.vlgmr.msra.gmra.mrb[16].mxu1 %vm512_vm6, %v511_v26 }
 0x2ab   :  { %v550_v33 = vpop.f32.mrb[16].mxu1 }
 0x2ac   :  { %v556_v34 = vadd.f32 %v550_v33, %v404_v32  ;;  %v636_v35 = vpop.f32.mrb[17].mxu1 }
 0x2ad   :  { %v553_v36 = vpop.f32.mrb[18].mxu1 }
 0x2ae   :  { %557 = vst [vmem:[%s832_s5] sm:$0xff] %v556_v34  ;;  %v637_v37 = vpop.f32.mrb[19].mxu1 }

</bundles_post_ra>
